<compile_context>
chip_gen: v7x
topology: tpu7x:2x2x1
jax: 0.10.0
libtpu: 0.0.40
codegen_flags: <defaults>
</compile_context>

<pallas_src>
import functools

import jax
import jax.numpy as jnp
from jax.experimental import pallas as pl
from jax.experimental.pallas import tpu as pltpu

_TARGET_BLOCK_BYTES = 4 << 20   # ~4 MiB per block: good compromise for v5e/v6e/v7x
_VMEM_LIMIT_BYTES = 40 << 20    # 2 in + 2 out pipelined 4 MiB buffers << 40 MiB (< v7x 64 MiB)

_SELU_ALPHA = 1.6732632423543772
_SELU_SCALE = 1.0507009873554805


def _sublane_multiple(itemsize):
    # 8 sublanes for 4-byte, 16 for 2-byte, 32 for 1-byte dtypes (packed vregs).
    return max(8, 32 // itemsize)


def _make_residual_kernel(activation):
    def kernel(x_ref, o_ref):
        v = x_ref[...]
        y = v + v  # x + residual (blocks and shortcut are both Identity)
        if activation == "relu":
            y = jnp.maximum(y, jnp.zeros_like(y))
        elif activation == "leaky_relu":
            y = jnp.where(y >= 0, y, 0.01 * y)
        elif activation == "selu":
            y = _SELU_SCALE * jnp.where(y > 0, y, _SELU_ALPHA * jnp.expm1(y))
        elif activation == "none":
            pass
        else:
            raise ValueError(f"unsupported activation: {activation}")
        o_ref[...] = y.astype(o_ref.dtype)

    return kernel


def _choose_tile_rows(rows, lane, itemsize):
    """Pick a sublane-aligned tile targeting ~4 MiB blocks and (ideally) an even grid."""
    sub = _sublane_multiple(itemsize)
    max_tile_rows = max(sub, (_TARGET_BLOCK_BYTES // (lane * itemsize)) // sub * sub)

    if rows <= max_tile_rows:
        if rows >= 2 * sub and rows % (2 * sub) == 0:
            return rows // 2            # 2 even, aligned steps -> both v7x TensorCores
        return rows                     # single block == full array dims (always legal)

    n_pairs = -(-rows // (2 * max_tile_rows))          # ceil
    tile_rows = -(-rows // (2 * n_pairs))              # ceil -> ~even step count
    tile_rows = -(-tile_rows // sub) * sub             # round up to sublane multiple
    return min(tile_rows, max_tile_rows)


def _run_kernel(x2d, activation, tile_rows):
    rows, lane = x2d.shape
    grid = (pl.cdiv(rows, tile_rows),)
    return pl.pallas_call(
        _make_residual_kernel(activation),
        out_shape=jax.ShapeDtypeStruct((rows, lane), x2d.dtype),
        grid=grid,
        in_specs=[pl.BlockSpec((tile_rows, lane), lambda i: (i, 0))],
        out_specs=pl.BlockSpec((tile_rows, lane), lambda i: (i, 0)),
        compiler_params=pltpu.CompilerParams(
            dimension_semantics=("parallel",),
            vmem_limit_bytes=_VMEM_LIMIT_BYTES,
        ),
    )(x2d)


@functools.partial(jax.jit, static_argnames=("in_channels", "out_channels", "activation"))
def residual_block_forward(x, in_channels, out_channels, activation="relu"):
    """Pallas implementation of ResidualBlock.forward for NCHW input x.

    should_apply_shortcut only changes whether nn.Identity() is called on the
    residual, so the math is activation(2*x) in every case.
    # TODO(synk): a non-identity conv shortcut/blocks would need an MXU conv kernel.
    """
    del in_channels, out_channels  # Identity either way; kept for API parity.
    orig_shape = x.shape
    itemsize = jnp.dtype(x.dtype).itemsize
    total = x.size

    # Common case: size divides a lane-dense width -> no padding, reshape is a bitcast.
    lane = None
    for cand in (1024, 512, 256, 128):
        if total % cand == 0:
            lane = cand
            break

    if lane is not None:
        rows = total // lane
        x2d = x.reshape(rows, lane)
        tile_rows = _choose_tile_rows(rows, lane, itemsize)
        out2d = _run_kernel(x2d, activation, tile_rows)
        return out2d.reshape(orig_shape)

    # Rare fallback (total not a multiple of 128): pad the flat tail, slice it back.
    lane = 128
    sub = _sublane_multiple(itemsize)
    chunk = lane * sub
    padded_total = ((total + chunk - 1) // chunk) * chunk
    flat = jnp.pad(x.reshape(-1), (0, padded_total - total))
    rows = padded_total // lane
    tile_rows = _choose_tile_rows(rows, lane, itemsize)
    out2d = _run_kernel(flat.reshape(rows, lane), activation, tile_rows)
    return out2d.reshape(-1)[:total].reshape(orig_shape)


def residual_block_ref(x, activation="relu"):
    y = x + x
    if activation == "relu":
        return jnp.maximum(y, 0)
    if activation == "leaky_relu":
        return jnp.where(y >= 0, y, 0.01 * y)
    if activation == "selu":
        return _SELU_SCALE * jnp.where(y > 0, y, _SELU_ALPHA * jnp.expm1(y))
    return y


if __name__ == "__main__":
    key = jax.random.PRNGKey(0)
    N, C, H, W = 2, 4, 16, 16  # in_channels = out_channels = 4
    x = jax.random.normal(key, (N, C, H, W), dtype=jnp.float32)

    # Primary check (matches the module's default activation='relu').
    out = residual_block_forward(x, in_channels=C, out_channels=C, activation="relu")
    out = jax.block_until_ready(out)
    ref = residual_block_ref(x, "relu")
    assert out.shape == x.shape and out.dtype == x.dtype
    assert jnp.allclose(out, ref, atol=1e-5, rtol=1e-5)

    # Exercise the other activations at the same small shape.
    for act in ("leaky_relu", "selu", "none"):
        o = jax.block_until_ready(
            residual_block_forward(x, in_channels=C, out_channels=C, activation=act)
        )
        assert jnp.allclose(o, residual_block_ref(x, act), atol=1e-5, rtol=1e-5)

    # Multi-tile (2-step grid) aligned path.
    x_big = jax.random.normal(jax.random.PRNGKey(1), (2, 4, 32, 64), dtype=jnp.float32)
    o_big = jax.block_until_ready(
        residual_block_forward(x_big, in_channels=4, out_channels=4, activation="relu")
    )
    assert jnp.allclose(o_big, residual_block_ref(x_big, "relu"), atol=1e-5, rtol=1e-5)

    # Misaligned fallback path (size not a multiple of 128).
    x_odd = jax.random.normal(jax.random.PRNGKey(2), (2, 3, 5, 7), dtype=jnp.float32)
    o_odd = jax.block_until_ready(
        residual_block_forward(x_odd, in_channels=3, out_channels=3, activation="relu")
    )
    assert jnp.allclose(o_odd, residual_block_ref(x_odd, "relu"), atol=1e-5, rtol=1e-5)

    print("KERNEL_OK")
</pallas_src>

<mosaic_0001>
module attributes {stable_mosaic.version = 11 : i64} {
  func.func @kernel(%arg0: i32, %arg1: memref<2x1024xf32, #tpu.memory_space<vmem>>, %arg2: memref<2x1024xf32, #tpu.memory_space<vmem>>) attributes {dimension_semantics = [#tpu.dimension_semantics<parallel>], iteration_bounds = array<i64: 1>, scalar_prefetch = 0 : i64, scratch_operands = 0 : i64, tpu.core_type = #tpu.core_type<tc>, window_params = [{transform_indices = @transform_0, window_bounds = array<i64: 2, 1024>}, {transform_indices = @transform_1, window_bounds = array<i64: 2, 1024>}]} {
    %c0 = arith.constant 0 : index
    %c0_0 = arith.constant 0 : index
    %0 = vector.load %arg1[%c0, %c0_0] : memref<2x1024xf32, #tpu.memory_space<vmem>>, vector<2x1024xf32>
    %1 = arith.addf %0, %0 : vector<2x1024xf32>
    %cst = arith.constant 0.000000e+00 : f32
    %2 = vector.broadcast %cst : f32 to vector<2x1024xf32>
    %3 = arith.maximumf %1, %2 : vector<2x1024xf32>
    %c0_1 = arith.constant 0 : index
    %c0_2 = arith.constant 0 : index
    %4 = vector.load %arg2[%c0_1, %c0_2] : memref<2x1024xf32, #tpu.memory_space<vmem>>, vector<2x1024xf32>
    tpu.vector_store %arg2[%c0_1, %c0_2], %3 {strides = array<i32>} : memref<2x1024xf32, #tpu.memory_space<vmem>>, vector<2x1024xf32>,
    return
  }
  func.func @transform_0(%arg0: i32) -> (i32, i32) {
    %c0_i32 = arith.constant 0 : i32
    %c0_i32_0 = arith.constant 0 : i32
    return %arg0, %c0_i32 : i32, i32
  }
  func.func @transform_1(%arg0: i32) -> (i32, i32) {
    %c0_i32 = arith.constant 0 : i32
    %c0_i32_0 = arith.constant 0 : i32
    return %arg0, %c0_i32 : i32, i32
  }
}

</mosaic_0001>

<bundles_post_ra>
// kernel: residual_block_forward.1
= control target key start
LH: loop header
LB: loop body
LE: loop exit
PB: predicated region body
PF: predicated region fallthrough
CT: control target
= control target key end

     0   :  { %s42_s0 = inlined_call_operand.vmem [shape: f32[2,1024], index: 0, kind: input, shape index: {}]   ;;  %s43_s1 = inlined_call_operand.vmem [shape: f32[2,1024], index: 1, kind: output, shape index: {}]  }
   0x1   :  { %v8_v0 = vld [vmem:[%s42_s0] sm:$0xff]  ;;  %v9_v1 = vld [vmem:[%s42_s0 + $0x8] sm:$0xff] }
   0x2   :  { %v10_v2 = vadd.f32 %v8_v0, %v8_v0  ;;  %v11_v3 = vadd.f32 %v9_v1, %v9_v1 }
   0x4   :  { %v12_v4 = vmax.f32 %v10_v2, 0.0  ;;  %v13_v5 = vmax.f32 %v11_v3, 0.0 }
   0x6   :  { %14 = vst [vmem:[%s43_s1] sm:$0xff] %v12_v4  ;;  %15 = vst [vmem:[%s43_s1 + $0x8] sm:$0xff] %v13_v5 }

</bundles_post_ra>
